<compile_context>
chip_gen: v7x
topology: tpu7x:2x2x1
jax: 0.10.0
libtpu: 0.0.40
codegen_flags: <defaults>
</compile_context>

<pallas_src>
import functools

import numpy as np
import jax
import jax.numpy as jnp
from jax.experimental import pallas as pl
from jax.experimental.pallas import tpu as pltpu

_NEG_INF = -1e30


def _round_up(x, m):
    return ((x + m - 1) // m) * m


def _textcnn_fused_kernel(ids_ref, emb_hbm, w_ref, mask_ref, b_ref, out_ref,
                          emb_vmem, sem, *, b_tile, l_pad, p_pad, k_max, e,
                          use_im2col):
    """One batch tile: DMA-gather -> conv (all filter sizes fused) -> mask ->
    max-over-time -> bias -> ReLU.

    ids_ref  : SMEM (B_pad*L_pad,) int32   flattened token ids (scalar prefetch)
    emb_hbm  : HBM  (V, E)                 embedding table (memory_space=ANY)
    w_ref    : VMEM (k_max*E, F_pad)       im2col-stacked conv weights (resident)
    mask_ref : VMEM (P_pad, F_pad) f32     additive mask: 0 valid, -1e30 invalid
    b_ref    : VMEM (1, F_pad)     f32     stacked conv biases (resident)
    out_ref  : VMEM (b_tile, F_pad)        pooled, biased, ReLU'd outputs
    emb_vmem : VMEM (b_tile*L_pad, E)      gathered embedding rows (scratch)
    sem      : DMA semaphore shared by all row copies
    """
    n_tok = b_tile * l_pad
    base = pl.program_id(0) * n_tok

    # ---- fused embedding gather: one row DMA per token, HBM -> VMEM --------
    @pl.loop(0, n_tok)
    def _start(t):
        tok = ids_ref[base + t]
        pltpu.make_async_copy(emb_hbm.at[pl.ds(tok, 1), :],
                              emb_vmem.at[pl.ds(t, 1), :],
                              sem).start()

    @pl.loop(0, n_tok)
    def _wait(t):
        # All copies have identical shape, so waits are interchangeable.
        pltpu.make_async_copy(emb_hbm.at[pl.ds(0, 1), :],
                              emb_vmem.at[pl.ds(0, 1), :],
                              sem).wait()

    emb = emb_vmem[...].reshape(b_tile, l_pad, e)          # (b_tile, L_pad, E)
    m = b_tile * p_pad
    f_pad = out_ref.shape[-1]

    if use_im2col:
        # Tiny E: concatenate k_max lane-shifted views so the single MXU
        # matmul sees a k_max*E-deep contraction.
        patches = jnp.concatenate(
            [emb[:, t:t + p_pad, :] for t in range(k_max)], axis=-1)
        acc = jnp.dot(patches.reshape(m, k_max * e), w_ref[...],
                      preferred_element_type=jnp.float32)
    else:
        # Production E (>= 128): per-tap matmul accumulation -- no k_max-x
        # duplication of the activation tile in VMEM/vregs.
        acc = jnp.zeros((m, f_pad), jnp.float32)
        for t in range(k_max):
            acc = acc + jnp.dot(emb[:, t:t + p_pad, :].reshape(m, e),
                                w_ref[t * e:(t + 1) * e, :],
                                preferred_element_type=jnp.float32)

    # Additive mask BEFORE the max (kills invalid time positions and padded
    # output columns), then max-over-time; bias + ReLU hoisted past the max.
    acc = acc.reshape(b_tile, p_pad, f_pad) + mask_ref[...]
    pooled = jnp.max(acc, axis=1)                          # (b_tile, F_pad)
    out_ref[...] = jnp.maximum(pooled + b_ref[...], 0.0).astype(out_ref.dtype)


def pack_params(params, filter_sizes, *, compute_dtype=jnp.float32,
                f_pad_granule=128):
    """One-time packing of TextCNN parameters (hoisted out of the jitted fwd).

    f_pad_granule: 128 (v5e MXU width); use 256 at production F_total on
    v6e/v7x to fill their 256-wide MXU N dimension.
    """
    filter_sizes = tuple(int(k) for k in filter_sizes)
    emb_table = params["embedding"]
    E = emb_table.shape[1]
    F = params["conv_w"][0].shape[-1]
    k_max = max(filter_sizes)
    F_pad = _round_up(len(filter_sizes) * F, f_pad_granule)

    w_stack = jnp.zeros((k_max, E, F_pad), compute_dtype)
    b_stack = jnp.zeros((1, F_pad), jnp.float32)
    for i, k in enumerate(filter_sizes):
        w_stack = w_stack.at[:k, :, i * F:(i + 1) * F].set(
            params["conv_w"][i].astype(compute_dtype))
        b_stack = b_stack.at[:, i * F:(i + 1) * F].set(
            params["conv_b"][i].astype(jnp.float32))

    return {"embedding": emb_table.astype(compute_dtype),
            "w_stack": w_stack.reshape(k_max * E, F_pad),
            "b_stack": b_stack}


def text_cnn_forward(tokens, packed, *, filter_sizes, num_filters,
                     target_m_rows=256, vmem_budget_bytes=None):
    """Forward pass matching TextCNN.forward (eval-mode dropout).

    tokens: (B, L) int32.  packed: output of pack_params.
    filter_sizes / num_filters are static Python values.
    Returns (B, num_filters * len(filter_sizes)) f32.
    """
    filter_sizes = tuple(int(k) for k in filter_sizes)
    emb_table = packed["embedding"]                 # (V, E)
    w_stack = packed["w_stack"]                     # (k_max*E, F_pad)
    b_stack = packed["b_stack"]                     # (1, F_pad) f32
    E = emb_table.shape[1]
    F_pad = w_stack.shape[-1]
    k_min, k_max = min(filter_sizes), max(filter_sizes)
    F_total = len(filter_sizes) * num_filters

    B, L = tokens.shape
    assert L >= k_max, "sequence shorter than largest filter size"
    P = L - k_min + 1                       # max #positions over filter sizes
    P_pad = _round_up(P, 8)                 # sublane-aligned position count
    L_pad = _round_up(max(L, P_pad + k_max - 1), 8)

    # Additive mask (jit constant): 0 for valid conv positions, -1e30 for
    # out-of-range positions / zero-padded output columns.
    mask = np.full((P_pad, F_pad), _NEG_INF, np.float32)
    for i, k in enumerate(filter_sizes):
        mask[:L - k + 1, i * num_filters:(i + 1) * num_filters] = 0.0
    mask = jnp.asarray(mask)

    use_im2col = E < 128                    # fill MXU contraction for tiny E
    cdtype = emb_table.dtype
    csize = cdtype.itemsize

    # ---- per-generation VMEM budget (64 MiB v7x vs 128 MiB v5e/v6e) --------
    try:
        vmem_cap = int(pltpu.get_tpu_info().vmem_capacity_bytes)
    except Exception:                        # conservative: v7x-sized VMEM
        vmem_cap = 64 * 1024 * 1024
    if vmem_budget_bytes is None:
        vmem_budget_bytes = vmem_cap // 2    # headroom for pipeline/compiler
    vmem_limit_bytes = min((vmem_cap * 3) // 4, 112 * 1024 * 1024)

    # ---- batch tile: target M = b_tile*P_pad rows, clamped by VMEM budget --
    b_tile = max(1, target_m_rows // P_pad)
    b_tile = max(8, (b_tile // 8) * 8)
    resident = 2 * (k_max * E * F_pad * csize + P_pad * F_pad * 4 + F_pad * 4)
    per_ex = (L_pad * E * csize              # gathered activations (scratch)
              + P_pad * F_pad * 4            # f32 pre-pool accumulator
              + 2 * F_pad * 4)               # double-buffered output tile
    if use_im2col:
        per_ex += P_pad * k_max * E * csize  # lane-concat im2col temporary
    fit = max(8, ((vmem_budget_bytes - resident) // max(per_ex, 1)) // 8 * 8)
    b_tile = min(b_tile, fit)
    b_tile = min(b_tile, _round_up(B, 8))    # don't tile past the padded batch
    B_pad = _round_up(B, b_tile)

    # Token ids, padded (padding id 0 is a valid row; its outputs are either
    # multiplied by zero-padded weight taps or masked, then sliced off).
    ids = jnp.pad(tokens.astype(jnp.int32),
                  ((0, B_pad - B), (0, L_pad - L))).reshape(-1)

    kernel = functools.partial(_textcnn_fused_kernel, b_tile=b_tile,
                               l_pad=L_pad, p_pad=P_pad, k_max=k_max, e=E,
                               use_im2col=use_im2col)

    # TODO(synk): on v7x, pl.Buffered(1) on the resident W/mask/bias specs
    # would reclaim their second pipeline buffer (a few MiB at production F).
    out = pl.pallas_call(
        kernel,
        out_shape=jax.ShapeDtypeStruct((B_pad, F_pad), jnp.float32),
        grid_spec=pltpu.PrefetchScalarGridSpec(
            num_scalar_prefetch=1,
            grid=(B_pad // b_tile,),
            in_specs=[
                pl.BlockSpec(memory_space=pl.ANY),                        # emb table (HBM)
                pl.BlockSpec((k_max * E, F_pad), lambda i, ids: (0, 0)),  # W (resident)
                pl.BlockSpec((P_pad, F_pad), lambda i, ids: (0, 0)),      # mask (resident)
                pl.BlockSpec((1, F_pad), lambda i, ids: (0, 0)),          # bias (resident)
            ],
            out_specs=pl.BlockSpec((b_tile, F_pad), lambda i, ids: (i, 0)),
            scratch_shapes=[
                pltpu.VMEM((b_tile * L_pad, E), cdtype),   # gathered emb rows
                pltpu.SemaphoreType.DMA,                   # shared row-DMA sem
            ]),
        compiler_params=pltpu.CompilerParams(
            dimension_semantics=("parallel",),
            vmem_limit_bytes=int(vmem_limit_bytes)),
    )(ids, emb_table, w_stack, mask, b_stack)

    # TODO(synk): nn.Dropout(0.5) training-mode stochastic masking not applied;
    # eval-mode (identity) semantics for determinism.
    return out[:B, :F_total]


def init_params(key, vocab_size, embed_size, num_filters, filter_sizes):
    keys = jax.random.split(key, 1 + 2 * len(filter_sizes))
    embedding = jax.random.normal(keys[0], (vocab_size, embed_size), jnp.float32)
    conv_w, conv_b = [], []
    for i, k in enumerate(filter_sizes):
        fan_in = k * embed_size
        scale = 1.0 / float(np.sqrt(fan_in))
        # PyTorch conv weight (F, 1, k, E) stored here as (k, E, F).
        w = scale * jax.random.normal(
            keys[1 + 2 * i], (k, embed_size, num_filters), jnp.float32)
        b = scale * jax.random.normal(
            keys[2 + 2 * i], (1, num_filters), jnp.float32)
        conv_w.append(w)
        conv_b.append(b)
    return {"embedding": embedding, "conv_w": conv_w, "conv_b": conv_b}


def _reference_forward(tokens, params, filter_sizes):
    """Pure-JAX reference matching the PyTorch module (eval mode)."""
    emb = jnp.take(params["embedding"], tokens, axis=0)   # (B, L, E)
    L = emb.shape[1]
    outs = []
    for i, k in enumerate(filter_sizes):
        w = params["conv_w"][i]                           # (k, E, F)
        b = params["conv_b"][i][0]                        # (F,)
        p = L - k + 1
        conv = sum(
            jnp.einsum("bpe,ef->bpf", emb[:, t:t + p, :], w[t],
                       precision=jax.lax.Precision.HIGHEST)
            for t in range(k)) + b
        outs.append(jnp.max(jax.nn.relu(conv), axis=1))   # (B, F)
    return jnp.concatenate(outs, axis=1)


if __name__ == "__main__":
    vocab_size, embed_size = 50, 32
    num_filters, filter_sizes = 8, (2, 3, 4)
    batch, seq_len = 2, 16

    root = jax.random.PRNGKey(0)
    pkey, xkey = jax.random.split(root)
    params = init_params(pkey, vocab_size, embed_size, num_filters,
                         filter_sizes)
    tokens = jax.random.randint(xkey, (batch, seq_len), 0, vocab_size,
                                dtype=jnp.int32)

    packed = pack_params(params, filter_sizes)        # once, outside the jit
    fwd = jax.jit(functools.partial(text_cnn_forward,
                                    filter_sizes=filter_sizes,
                                    num_filters=num_filters))
    out = jax.block_until_ready(fwd(tokens, packed))

    assert out.shape == (batch, num_filters * len(filter_sizes)), out.shape
    assert out.dtype == jnp.float32

    ref = _reference_forward(tokens, params, filter_sizes)
    assert jnp.allclose(out, ref, rtol=1e-2, atol=1e-2), (
        float(jnp.max(jnp.abs(out - ref))))

    print("KERNEL_OK")
</pallas_src>

<mosaic_0001>
module attributes {stable_mosaic.version = 11 : i64} {
  func.func @_textcnn_fused_kernel(%arg0: i32, %arg1: memref<192xi32, #tpu.memory_space<smem>>, %arg2: memref<50x32xf32, #tpu.memory_space<any>>, %arg3: memref<128x128xf32, #tpu.memory_space<vmem>>, %arg4: memref<16x128xf32, #tpu.memory_space<vmem>>, %arg5: memref<1x128xf32, #tpu.memory_space<vmem>>, %arg6: memref<8x128xf32, #tpu.memory_space<vmem>>, %arg7: memref<192x32xf32, #tpu.memory_space<vmem>>, %arg8: memref<!tpu.dma_semaphore, #tpu.memory_space<semaphore_mem>>) attributes {dimension_semantics = [#tpu.dimension_semantics<parallel>], iteration_bounds = array<i64: 1>, scalar_prefetch = 1 : i64, scratch_operands = 2 : i64, tpu.core_type = #tpu.core_type<tc>, window_params = [{}, {pipeline_mode = #tpu.pipeline_mode<synchronous>, transform_indices = @transform_1, window_bounds = array<i64: 128, 128>}, {pipeline_mode = #tpu.pipeline_mode<synchronous>, transform_indices = @transform_2, window_bounds = array<i64: 16, 128>}, {pipeline_mode = #tpu.pipeline_mode<synchronous>, transform_indices = @transform_3, window_bounds = array<i64: 1, 128>}, {transform_indices = @transform_4, window_bounds = array<i64: 8, 128>}]} {
    %c192_i32 = arith.constant 192 : i32
    %0 = arith.muli %arg0, %c192_i32 : i32
    %c0_i32 = arith.constant 0 : i32
    %c192_i32_0 = arith.constant 192 : i32
    %1 = arith.addi %c0_i32, %c192_i32_0 : i32
    %c1_i32 = arith.constant 1 : i32
    scf.for %arg9 = %c0_i32 to %1 step %c1_i32  : i32 {
      %c1_i32_16 = arith.constant 1 : i32
      %25 = arith.muli %arg9, %c1_i32_16 : i32
      %c0_i32_17 = arith.constant 0 : i32
      %26 = arith.addi %c0_i32_17, %25 : i32
      %27 = arith.addi %0, %26 : i32
      %28 = arith.index_cast %27 : i32 to index
      %29 = memref.load %arg1[%28] : memref<192xi32, #tpu.memory_space<smem>>
      %c0_i32_18 = arith.constant 0 : i32
      %30 = tpu.memref_slice %arg2[%29, %c0_i32_18] : memref<50x32xf32, #tpu.memory_space<any>> -> memref<1x32xf32, #tpu.memory_space<any>>
      %c0_i32_19 = arith.constant 0 : i32
      %31 = tpu.memref_slice %arg7[%26, %c0_i32_19] : memref<192x32xf32, #tpu.memory_space<vmem>> -> memref<1x32xf32, #tpu.memory_space<vmem>>
      tpu.enqueue_dma source(%30 : memref<1x32xf32, #tpu.memory_space<any>>) target(%31 : memref<1x32xf32, #tpu.memory_space<vmem>>) target_semaphore(%arg8 : memref<!tpu.dma_semaphore, #tpu.memory_space<semaphore_mem>>)
    }
    %c192_i32_1 = arith.constant 192 : i32
    %c0_i32_2 = arith.constant 0 : i32
    %c192_i32_3 = arith.constant 192 : i32
    %2 = arith.addi %c0_i32_2, %c192_i32_3 : i32
    %c1_i32_4 = arith.constant 1 : i32
    scf.for %arg9 = %c0_i32_2 to %2 step %c1_i32_4  : i32 {
      %c0_i32_16 = arith.constant 0 : i32
      %c0_i32_17 = arith.constant 0 : i32
      %25 = tpu.memref_slice %arg2[%c0_i32_16, %c0_i32_17] : memref<50x32xf32, #tpu.memory_space<any>> -> memref<1x32xf32, #tpu.memory_space<any>>
      %c0_i32_18 = arith.constant 0 : i32
      %c0_i32_19 = arith.constant 0 : i32
      %26 = tpu.memref_slice %arg7[%c0_i32_18, %c0_i32_19] : memref<192x32xf32, #tpu.memory_space<vmem>> -> memref<1x32xf32, #tpu.memory_space<vmem>>
      tpu.wait_dma2 semaphore(%arg8 : memref<!tpu.dma_semaphore, #tpu.memory_space<semaphore_mem>>) src(%25 : memref<1x32xf32, #tpu.memory_space<any>>) dst(%26 : memref<1x32xf32, #tpu.memory_space<vmem>>)
    }
    %c0 = arith.constant 0 : index
    %c0_5 = arith.constant 0 : index
    %3 = vector.load %arg7[%c0, %c0_5] : memref<192x32xf32, #tpu.memory_space<vmem>>, vector<192x32xf32>
    %4 = vector.shape_cast %3 : vector<192x32xf32> to vector<8x24x32xf32>
    %5 = vector.extract_strided_slice %4 {offsets = [0, 0, 0], sizes = [8, 16, 32], strides = [1, 1, 1]} : vector<8x24x32xf32> to vector<8x16x32xf32>
    %6 = vector.extract_strided_slice %4 {offsets = [0, 1, 0], sizes = [8, 16, 32], strides = [1, 1, 1]} : vector<8x24x32xf32> to vector<8x16x32xf32>
    %7 = vector.extract_strided_slice %4 {offsets = [0, 2, 0], sizes = [8, 16, 32], strides = [1, 1, 1]} : vector<8x24x32xf32> to vector<8x16x32xf32>
    %8 = vector.extract_strided_slice %4 {offsets = [0, 3, 0], sizes = [8, 16, 32], strides = [1, 1, 1]} : vector<8x24x32xf32> to vector<8x16x32xf32>
    %9 = tpu.concatenate %5, %6, %7, %8 in 2 : vector<8x16x32xf32>, vector<8x16x32xf32>, vector<8x16x32xf32>, vector<8x16x32xf32> -> vector<8x16x128xf32>
    %10 = vector.shape_cast %9 : vector<8x16x128xf32> to vector<128x128xf32>
    %c0_6 = arith.constant 0 : index
    %c0_7 = arith.constant 0 : index
    %11 = vector.load %arg3[%c0_6, %c0_7] : memref<128x128xf32, #tpu.memory_space<vmem>>, vector<128x128xf32>
    %cst = arith.constant dense<0.000000e+00> : vector<128x128xf32>
    %12 = tpu.matmul %10, %11, %cst {dimension_numbers = #tpu.dot_dimension_numbers<[1], [0], [0], [1], [0, 0, 1, 1], [], []>} : vector<128x128xf32>, vector<128x128xf32>, vector<128x128xf32> -> vector<128x128xf32>
    %13 = vector.shape_cast %12 : vector<128x128xf32> to vector<8x16x128xf32>
    %c0_8 = arith.constant 0 : index
    %c0_9 = arith.constant 0 : index
    %14 = vector.load %arg4[%c0_8, %c0_9] : memref<16x128xf32, #tpu.memory_space<vmem>>, vector<16x128xf32>
    %15 = vector.shape_cast %14 : vector<16x128xf32> to vector<1x16x128xf32>
    %16 = vector.broadcast %15 : vector<1x16x128xf32> to vector<8x16x128xf32>
    %17 = arith.addf %13, %16 : vector<8x16x128xf32>
    %cst_10 = arith.constant dense<0xFF800000> : vector<8x128xf32>
    %18 = vector.multi_reduction <maximumf>, %17, %cst_10 [1] : vector<8x16x128xf32> to vector<8x128xf32>
    %c0_11 = arith.constant 0 : index
    %c0_12 = arith.constant 0 : index
    %19 = vector.load %arg5[%c0_11, %c0_12] : memref<1x128xf32, #tpu.memory_space<vmem>>, vector<1x128xf32>
    %20 = vector.broadcast %19 : vector<1x128xf32> to vector<8x128xf32>
    %21 = arith.addf %18, %20 : vector<8x128xf32>
    %cst_13 = arith.constant 0.000000e+00 : f32
    %22 = vector.broadcast %cst_13 : f32 to vector<8x128xf32>
    %23 = arith.maximumf %21, %22 : vector<8x128xf32>
    %c0_14 = arith.constant 0 : index
    %c0_15 = arith.constant 0 : index
    %24 = vector.load %arg6[%c0_14, %c0_15] : memref<8x128xf32, #tpu.memory_space<vmem>>, vector<8x128xf32>
    tpu.vector_store %arg6[%c0_14, %c0_15], %23 {strides = array<i32>} : memref<8x128xf32, #tpu.memory_space<vmem>>, vector<8x128xf32>,
    return
  }
  func.func @transform_1(%arg0: i32, %arg1: memref<192xi32, #tpu.memory_space<smem>>) -> (i32, i32) {
    %c0_i32 = arith.constant 0 : i32
    %c0_i32_0 = arith.constant 0 : i32
    %c0_i32_1 = arith.constant 0 : i32
    return %c0_i32, %c0_i32_0 : i32, i32
  }
  func.func @transform_2(%arg0: i32, %arg1: memref<192xi32, #tpu.memory_space<smem>>) -> (i32, i32) {
    %c0_i32 = arith.constant 0 : i32
    %c0_i32_0 = arith.constant 0 : i32
    %c0_i32_1 = arith.constant 0 : i32
    return %c0_i32, %c0_i32_0 : i32, i32
  }
  func.func @transform_3(%arg0: i32, %arg1: memref<192xi32, #tpu.memory_space<smem>>) -> (i32, i32) {
    %c0_i32 = arith.constant 0 : i32
    %c0_i32_0 = arith.constant 0 : i32
    %c0_i32_1 = arith.constant 0 : i32
    return %c0_i32, %c0_i32_0 : i32, i32
  }
  func.func @transform_4(%arg0: i32, %arg1: memref<192xi32, #tpu.memory_space<smem>>) -> (i32, i32) {
    %c0_i32 = arith.constant 0 : i32
    %c0_i32_0 = arith.constant 0 : i32
    return %arg0, %c0_i32 : i32, i32
  }
}

</mosaic_0001>

<bundles_post_ra>
// kernel: text_cnn_forward.1
= control target key start
LH: loop header
LB: loop body
LE: loop exit
PB: predicated region body
PF: predicated region fallthrough
CT: control target
= control target key end

     0   :  { %s1438_s0 = inlined_call_operand.vmem [shape: s32[192], index: 0, kind: input, shape index: {}]   ;;  %s1439_s1 = inlined_call_operand.vmem [shape: f32[50,32], index: 1, kind: input, shape index: {}]   ;;  %s1440_s2 = inlined_call_operand.hbm [shape: f32[128,128], index: 2, kind: input, shape index: {}]   ;;  %s1441_s3 = inlined_call_operand.vmem [shape: f32[16,128], index: 3, kind: input, shape index: {}]   ;;  %s1442_s4 = inlined_call_operand.vmem [shape: f32[1,128], index: 4, kind: input, shape index: {}]   ;;  %s1443_s5 = inlined_call_operand.vmem [shape: f32[8,128], index: 5, kind: output, shape index: {}]  }
   0x1   :  { %s10_s20 = sshll.u32 %s1438_s0, 4  ;;  %s11_s20 = int_to_ptr.vmem [resolvable:$true] %s10_s20 }
   0x2   :  { %s1069_s21 = scalar_lea.vmem %s11_s20, 32  ;;  %p1074_p1 = scmp.lt.s32.totalorder %s11_s20, %s11_s20 }
   0x3   :  { %p1070_p0 = scmp.ne.s32.totalorder %s11_s20, %s1069_s21  ;;  %p1075_p2 = scmp.lt.s32.totalorder %s1069_s21, %s1069_s21 }
   0x5   :  { %p1076_p3 = por %p1075_p2, %p1074_p1 }
   0x7   :  { %p1077_p4 = pnand %p1076_p3, %p1070_p0 }
   0x9   :  { %1080 = shalt.err (!%p1077_p4)  }
   0xa   :  { %s1125_s22 = smov [#allocation5]  }
   0xb   :  { %13 = dma.vmem_to_smem %s11_s20, 32, %s1125_s22, [#allocation4] }
   0xc   :  { %1111 = dma.done.wait [#allocation4], 32 }
   0xd   :  { %1112 = vsyncadd [#allocation4], 4294967264 }
   0xe   :  { %15 = sfence }
   0xf   :  { %16 = vsyncpa [#allocation7], 0  ;;  %s1126_s23 = smov [#allocation6]   ;;  %s1081_s0 = scalar_lea.hbm %s1440_s2, 2048 }
  0x10   :  { %s22_s24 = sshll.u32 %s1126_s23, 4  ;;  %p1082_p5 = scmp.ne.s32.totalorder %s1440_s2, %s1081_s0  ;;  %s23_s24 = int_to_ptr.vmem [resolvable:$true] %s22_s24 }
  0x11   :  { %p1085_p6 = scmp.lt.u32.totalorder %s1081_s0, %s1440_s2 }
  0x13   :  { %p1087_p7 = pnand %p1085_p6, %p1082_p5 }
  0x15   :  { %1090 = shalt.err (!%p1087_p7)
}
  0x16   :  { %s1091_s6 = scalar_lea.vmem %s23_s24, 2048  ;;  %p1096_p9 = scmp.lt.s32.totalorder %s23_s24, %s23_s24 }
  0x17   :  { %p1092_p8 = scmp.ne.s32.totalorder %s23_s24, %s1091_s6  ;;  %p1097_p10 = scmp.lt.s32.totalorder %s1091_s6, %s1091_s6 }
  0x19   :  { %p1098_p11 = por %p1097_p10, %p1096_p9 }
  0x1b   :  { %p1099_p12 = pnand %p1098_p11, %p1092_p8 }
  0x1d   :  { %1102 = shalt.err (!%p1099_p12)
}
  0x1e   :  { %s1127_s7 = smov 128   ;;  %s1128_s8 = smov 8  }
  0x1f   :  { %28 = dma.hbm_to_vmem [thread:$0]  %s1440_s2, 2048, %s23_s24, [#allocation7], %s1127_s7, %s1127_s7, %s1128_s8  }
  0x20   :  { %1113 = dma.done.wait [#allocation7], 2048  }
  0x21   :  { %1114 = vsyncadd [#allocation7], 4294965248  ;;  %s1117_s11 = smov 0  }
  0x22 LB: > { %s44_s12 = sld [smem:[#allocation5 + %s1119_s11]]  ;;  %s46_s16 = scalar_lea.vmem [#allocation2], %s1119_s11  ;;  %s1119_s11 = sphi %s1117_s11, %s42_s11  }
  0x28   : > { %s45_s15 = scalar_lea.vmem %s1439_s1, %s44_s12 }
  0x29   : > { %v64_v0 = vld [vmem:[%s45_s15] sm:$0x1] }
  0x2a   : > { %65 = vst [vmem:[%s46_s16] sm:$0x1] %v64_v0 }
  0x2b   : > { %90 = vsyncadd [#allocation3], 16  ;;  %s42_s11 = sadd.s32 1, %s1119_s11  }
  0x2c   : > { %p39_p13 = scmp.ge.s32.totalorder %s42_s11, 192  }
  0x2d   :  { %s1121_s2 = smov (%p39_p13), 0  }
  0x2e   :  { %41 = sbr.rel (!%p39_p13) target bundleno = 34 (0x22), region = 92 }
  0x35 LB: > { %1115 = dma.done.wait [#allocation3], 16  ;;  %s1123_s2 = sphi %s1121_s2, %s96_s2  }
  0x36   : > { %1116 = vsyncadd [#allocation3], 4294967280  ;;  %s96_s2 = sadd.s32 1, %s1123_s2  }
  0x37   : > { %p93_p0 = scmp.ge.s32.totalorder %s96_s2, 192  }
  0x38   :  { %v1180_v1 = vld [vmem:[#allocation2] sm:$0xff] (%p93_p0)  ;;  %v1182_v2 = vld [vmem:[#allocation2 + $0x8] sm:$0xff] (%p93_p0)  ;;  %v102_v3 = vld [vmem:[#allocation2 + $0x10] sm:$0xff] (%p93_p0)  ;;  %vm326_vm0 = vcmask (%p93_p0), 1044480   ;;  %vm148_vm1 = vcmask (%p93_p0), 1046528   ;;  %vm237_vm2 = vcmask (%p93_p0), 1045504  }
  0x39   :  { %95 = sbr.rel (!%p93_p0) target bundleno = 53 (0x35), region = 103  ;;  %v327_v4 = vrot.slane (%p93_p0), %v1180_v1, 3  ;;  %v328_v5 = vrot.slane (%p93_p0), %v1182_v2, 3  ;;  %v330_v6 = vrot.slane (%p93_p0), %v102_v3, 3  ;;  %v149_v7 = vrot.slane (%p93_p0), %v1180_v1, 1  ;;  %v1187_v8 = vld [vmem:[#allocation2 + $0x18] sm:$0xff] (%p93_p0) }
  0x3a   :  { %v150_v9 = vrot.slane (%p93_p0), %v1182_v2, 1  ;;  %v152_v10 = vrot.slane (%p93_p0), %v102_v3, 1  ;;  %v1190_v11 = vld [vmem:[#allocation2 + $0x20] sm:$0xff] (%p93_p0)  ;;  %v1194_v13 = vld [vmem:[#allocation2 + $0x68] sm:$0xff] (%p93_p0)  ;;  %v154_v14 = vrot.slane (%p93_p0), %v1187_v8, 1  ;;  %v238_v25 = vrot.slane (%p93_p0), %v1180_v1, 2 }
  0x3b   :  { %v1192_v12 = vld [vmem:[#allocation2 + $0x60] sm:$0xff] (%p93_p0)  ;;  %v329_v15 = vsel (%p93_p0), %vm326_vm0, %v327_v4, %v328_v5  ;;  %v331_v16 = vsel (%p93_p0), %vm326_vm0, %v328_v5, %v330_v6  ;;  %v155_v17 = vrot.slane (%p93_p0), %v1190_v11, 1  ;;  %v170_v22 = vrot.slane (%p93_p0), %v1194_v13, 1  ;;  %v105_v26 = vld [vmem:[#allocation2 + $0x28] sm:$0xff] (%p93_p0)  ;;  %v114_v27 = vld [vmem:[#allocation2 + $0x70] sm:$0xff] (%p93_p0)  ;;  %s1129_s1 = smov (%p93_p0), 96  }
  0x3c   :  { %v169_v18 = vrot.slane (%p93_p0), %v1192_v12, 1  ;;  %v959_v19 = vpack.i.bf16 (%p93_p0), %v331_v16, %v329_v15  ;;  %v151_v20 = vsel (%p93_p0), %vm148_vm1, %v149_v7, %v150_v9  ;;  %v153_v21 = vsel (%p93_p0), %vm148_vm1, %v150_v9, %v152_v10  ;;  %s1130_s17 = smov (%p93_p0), 32   ;;  %v1219_v44 = vld [vmem:[#allocation2 + $0x30] sm:$0xff] (%p93_p0)  ;;  %v1221_v45 = vld [vmem:[#allocation2 + $0x38] sm:$0xff] (%p93_p0)  ;;  %v1229_v51 = vld [vmem:[#allocation2 + $0x80] sm:$0xff] (%p93_p0)  ;;  %s1131_s18 = smov (%p93_p0), 64  }
  0x3d   :  { %v949_v23 = vpack.i.bf16 (%p93_p0), %v153_v21, %v151_v20  ;;  %v156_v24 = vsel (%p93_p0), %vm148_vm1, %v154_v14, %v155_v17  ;;  %v239_v29 = vrot.slane (%p93_p0), %v1182_v2, 2  ;;  %v241_v30 = vrot.slane (%p93_p0), %v102_v3, 2  ;;  %v1227_v50 = vld [vmem:[#allocation2 + $0x78] sm:$0xff] (%p93_p0)  ;;  %v108_v6 = vld [vmem:[#allocation2 + $0x40] sm:$0xff] (%p93_p0)  ;;  %v117_v7 = vld [vmem:[#allocation2 + $0x88] sm:$0xff] (%p93_p0) }
  0x3e   :  { %960 = vrot.lane.b32.xlu1 (%p93_p0), %v959_v19, %s1129_s1  ;;  %v171_v28 = vsel (%p93_p0), %vm148_vm1, %v169_v18, %v170_v22  ;;  %v243_v31 = vrot.slane (%p93_p0), %v1187_v8, 2  ;;  %v244_v33 = vrot.slane (%p93_p0), %v1190_v11, 2  ;;  %v258_v34 = vrot.slane (%p93_p0), %v1192_v12, 2 }
  0x3f   :  { %950 = vrot.lane.b32.xlu0 (%p93_p0), %v949_v23, %s1130_s17  ;;  %v964_v32 = vpack.i.bf16 (%p93_p0), %v171_v28, %v156_v24  ;;  %v259_v35 = vrot.slane (%p93_p0), %v1194_v13, 2  ;;  %v240_v36 = vsel (%p93_p0), %vm237_vm2, %v238_v25, %v239_v29  ;;  %v242_v37 = vsel (%p93_p0), %vm237_vm2, %v239_v29, %v241_v30  ;;  %v1258_v28 = vld [vmem:[#allocation2 + $0x50] sm:$0xff] (%p93_p0) }
  0x40   :  { %v157_v38 = vrot.slane %v105_v26, 1  ;;  %v172_v39 = vrot.slane %v114_v27, 1  ;;  %v954_v40 = vpack.i.bf16 %v242_v37, %v240_v36  ;;  %v245_v41 = vsel %vm237_vm2, %v243_v31, %v244_v33 }
  0x41   :  { %v260_v42 = vsel %vm237_vm2, %v258_v34, %v259_v35  ;;  %v332_v43 = vrot.slane %v1187_v8, 3  ;;  %v333_v49 = vrot.slane %v1190_v11, 3  ;;  %v347_v53 = vrot.slane %v1192_v12, 3 }
  0x42   :  { %965 = vrot.lane.b32.xlu1 %v964_v32, %s1130_s17  ;;  %v974_v46 = vpack.i.bf16 %v260_v42, %v245_v41  ;;  %v158_v47 = vsel %vm148_vm1, %v155_v17, %v157_v38  ;;  %v173_v48 = vsel %vm148_vm1, %v170_v22, %v172_v39  ;;  %v348_v54 = vrot.slane %v1194_v13, 3  ;;  %v1263_v32 = vld [vmem:[#allocation2 + $0x90] sm:$0xff] }
  0x43   :  { %955 = vrot.lane.b32.xlu0 %v954_v40, %s1131_s18  ;;  %v969_v52 = vpack.i.bf16 %v173_v48, %v158_v47  ;;  %v246_v55 = vrot.slane %v105_v26, 2  ;;  %v334_v56 = vsel %vm326_vm0, %v332_v43, %v333_v49  ;;  %v261_v57 = vrot.slane %v114_v27, 2 }
  0x44   :  { %v159_v58 = vrot.slane %v1219_v44, 1  ;;  %v160_v59 = vrot.slane %v1221_v45, 1  ;;  %v349_v60 = vsel %vm326_vm0, %v347_v53, %v348_v54  ;;  %v174_v62 = vrot.slane %v1227_v50, 1 }
  0x45   :  { %v247_v61 = vsel %vm237_vm2, %v244_v33, %v246_v55  ;;  %v175_v63 = vrot.slane %v1229_v51, 1  ;;  %v984_v0 = vpack.i.bf16 %v349_v60, %v334_v56  ;;  %v262_v3 = vsel %vm237_vm2, %v259_v35, %v261_v57  ;;  %v1265_v33 = vld [vmem:[#allocation2 + $0x98] sm:$0xff] }
  0x46   :  { %975 = vrot.lane.b32.xlu1 %v974_v46, %s1131_s18  ;;  %v161_v4 = vsel %vm148_vm1, %v159_v58, %v160_v59  ;;  %v335_v5 = vrot.slane %v105_v26, 3  ;;  %v979_v9 = vpack.i.bf16 %v262_v3, %v247_v61  ;;  %v350_v14 = vrot.slane %v114_v27, 3  ;;  %v1256_v27 = vld [vmem:[#allocation2 + $0x48] sm:$0xff]  ;;  %v111_v58 = vld [vmem:[#allocation2 + $0x58] sm:$0xff] }
  0x47   :  { %970 = vrot.lane.b32.xlu0 %v969_v52, %s1130_s17  ;;  %v176_v10 = vsel %vm148_vm1, %v174_v62, %v175_v63  ;;  %v248_v15 = vrot.slane %v1219_v44, 2  ;;  %v249_v17 = vrot.slane %v1221_v45, 2  ;;  %v263_v18 = vrot.slane %v1227_v50, 2 }
  0x48   :  { %v336_v16 = vsel %vm326_vm0, %v333_v49, %v335_v5  ;;  %v351_v19 = vsel %vm326_vm0, %v348_v54, %v350_v14  ;;  %v264_v20 = vrot.slane %v1229_v51, 2  ;;  %v162_v21 = vrot.slane %v108_v6, 1 }
  0x49   :  { %v177_v22 = vrot.slane %v117_v7, 1  ;;  %v994_v23 = vpack.i.bf16 %v176_v10, %v161_v4  ;;  %v250_v24 = vsel %vm237_vm2, %v248_v15, %v249_v17  ;;  %v337_v25 = vrot.slane %v1219_v44, 3 }
  0x4a   :  { %985 = vrot.lane.b32.xlu1 %v984_v0, %s1129_s1  ;;  %v338_v26 = vrot.slane %v1221_v45, 3  ;;  %v989_v29 = vpack.i.bf16 %v351_v19, %v336_v16  ;;  %v265_v30 = vsel %vm237_vm2, %v263_v18, %v264_v20  ;;  %v352_v31 = vrot.slane %v1227_v50, 3 }
  0x4b   :  { %980 = vrot.lane.b32.xlu0 %v979_v9, %s1131_s18  ;;  %v1004_v34 = vpack.i.bf16 %v265_v30, %v250_v24  ;;  %v163_v35 = vsel %vm148_vm1, %v160_v59, %v162_v21  ;;  %v178_v36 = vsel %vm148_vm1, %v175_v63, %v177_v22  ;;  %v353_v37 = vrot.slane %v1229_v51, 3  ;;  %v120_v59 = vld [vmem:[#allocation2 + $0xa0] sm:$0xff]  ;;  %v1298_v21 = vld [vmem:[#allocation2 + $0xa8] sm:$0xff]  ;;  %v1300_v22 = vld [vmem:[#allocation2 + $0xb0] sm:$0xff] }
  0x4c   :  { %v251_v38 = vrot.slane %v108_v6, 2  ;;  %v266_v39 = vrot.slane %v117_v7, 2  ;;  %v164_v40 = vrot.slane %v1256_v27, 1  ;;  %v165_v41 = vrot.slane %v1258_v28, 1 }
  0x4d   :  { %v339_v42 = vsel %vm326_vm0, %v337_v25, %v338_v26  ;;  %v354_v43 = vsel %vm326_vm0, %v352_v31, %v353_v37  ;;  %v179_v46 = vrot.slane %v1263_v32, 1  ;;  %v180_v47 = vrot.slane %v1265_v33, 1  ;;  %v123_v25 = vld [vmem:[#allocation2 + $0xb8] sm:$0xff] }
  0x4e   :  { %995 = vrot.lane.b32.xlu1 %v994_v23, %s1130_s17  ;;  %v999_v48 = vpack.i.bf16 %v178_v36, %v163_v35  ;;  %v252_v49 = vsel %vm237_vm2, %v249_v17, %v251_v38  ;;  %v267_v52 = vsel %vm237_vm2, %v264_v20, %v266_v39  ;;  %v340_v53 = vrot.slane %v108_v6, 3  ;;  %v468_v35 = vld [vmem:[#allocation6 + $0x10] sm:$0xff]  ;;  %v469_v36 = vld [vmem:[#allocation6 + $0x18] sm:$0xff] }
  0x4f   :  { %990 = vrot.lane.b32.xlu0 %v989_v29, %s1129_s1  ;;  %v355_v54 = vrot.slane %v117_v7, 3  ;;  %v1014_v55 = vpack.i.bf16 %v354_v43, %v339_v42  ;;  %v166_v56 = vsel %vm148_vm1, %v164_v40, %v165_v41  ;;  %v181_v57 = vsel %vm148_vm1, %v179_v46, %v180_v47 }
  0x50   :  { %v253_v60 = vrot.slane %v1256_v27, 2  ;;  %v254_v61 = vrot.slane %v1258_v28, 2  ;;  %v268_v62 = vrot.slane %v1263_v32, 2  ;;  %v269_v63 = vrot.slane %v1265_v33, 2 }
  0x51   :  { %v1009_v0 = vpack.i.bf16 %v267_v52, %v252_v49  ;;  %v341_v3 = vsel %vm326_vm0, %v338_v26, %v340_v53  ;;  %v356_v4 = vsel %vm326_vm0, %v353_v37, %v355_v54  ;;  %v167_v5 = vrot.slane %v111_v58, 1  ;;  %v466_v26 = vld [vmem:[#allocation6] sm:$0xff]  ;;  %v471_v54 = vld [vmem:[#allocation6 + $0x28] sm:$0xff] }
  0x52   :  { %1005 = vrot.lane.b32.xlu1 %v1004_v34, %s1131_s18  ;;  %v182_v6 = vrot.slane %v120_v59, 1  ;;  %v1024_v7 = vpack.i.bf16 %v181_v57, %v166_v56  ;;  %v342_v9 = vrot.slane %v1256_v27, 3  ;;  %v343_v10 = vrot.slane %v1258_v28, 3  ;;  %v467_v34 = vld [vmem:[#allocation6 + $0x8] sm:$0xff]  ;;  %v470_v53 = vld [vmem:[#allocation6 + $0x20] sm:$0xff] }
  0x53   :  { %1000 = vrot.lane.b32.xlu0 %v999_v48, %s1130_s17  ;;  %v255_v14 = vsel %vm237_vm2, %v253_v60, %v254_v61  ;;  %v270_v15 = vsel %vm237_vm2, %v268_v62, %v269_v63  ;;  %v357_v16 = vrot.slane %v1263_v32, 3  ;;  %v358_v17 = vrot.slane %v1265_v33, 3 }
  0x54   :  { %v1019_v18 = vpack.i.bf16 %v356_v4, %v341_v3  ;;  %v256_v19 = vrot.slane %v111_v58, 2  ;;  %v271_v20 = vrot.slane %v120_v59, 2  ;;  %v168_v23 = vsel %vm148_vm1, %v165_v41, %v167_v5  ;;  %v472_v4 = vld [vmem:[#allocation6 + $0x30] sm:$0xff]  ;;  %v473_v5 = vld [vmem:[#allocation6 + $0x38] sm:$0xff] }
  0x55   :  { %v183_v24 = vsel %vm148_vm1, %v180_v47, %v182_v6  ;;  %v1034_v29 = vpack.i.bf16 %v270_v15, %v255_v14  ;;  %v344_v30 = vsel %vm326_vm0, %v342_v9, %v343_v10  ;;  %v345_v31 = vrot.slane %v111_v58, 3 }
  0x56   :  { %1015 = vrot.lane.b32.xlu1 %v1014_v55, %s1129_s1  ;;  %v359_v37 = vsel %vm326_vm0, %v357_v16, %v358_v17  ;;  %v360_v38 = vrot.slane %v120_v59, 3  ;;  %v184_v39 = vrot.slane %v1298_v21, 1  ;;  %v185_v40 = vrot.slane %v1300_v22, 1 }
  0x57   :  { %1010 = vrot.lane.b32.xlu0 %v1009_v0, %s1131_s18  ;;  %v1029_v41 = vpack.i.bf16 %v183_v24, %v168_v23  ;;  %v257_v42 = vsel %vm237_vm2, %v254_v61, %v256_v19  ;;  %v272_v43 = vsel %vm237_vm2, %v269_v63, %v271_v20  ;;  %v187_v46 = vrot.slane %v123_v25, 1  ;;  %v476_v24 = vld [vmem:[#allocation6 + $0x50] sm:$0xff] }
  0x58   :  { %v878_v47 = vpack.c.bf16 %v467_v34, %v466_v26  ;;  %v882_v48 = vpack.c.bf16 %v469_v36, %v468_v35  ;;  %v1044_v49 = vpack.i.bf16 %v359_v37, %v344_v30  ;;  %v346_v52 = vsel %vm326_vm0, %v343_v10, %v345_v31  ;;  %v479_v30 = vld [vmem:[#allocation6 + $0x68] sm:$0xff]  ;;  %v480_v34 = vld [vmem:[#allocation6 + $0x70] sm:$0xff]  ;;  %v481_v35 = vld [vmem:[#allocation6 + $0x78] sm:$0xff] }
  0x59   :  { %v1039_v55 = vpack.i.bf16 %v272_v43, %v257_v42  ;;  %v361_v56 = vsel %vm326_vm0, %v358_v17, %v360_v38  ;;  %v186_v57 = vsel %vm148_vm1, %v184_v39, %v185_v40  ;;  %v188_v58 = vsel %vm148_vm1, %v185_v40, %v187_v46  ;;  %v474_v17 = vld [vmem:[#allocation6 + $0x40] sm:$0xff] }
  0x5a   :  { %1025 = vrot.lane.b32.xlu1 %v1024_v7, %s1130_s17  ;;  %879 = vmatprep.subr.bf16.mxu0 %v878_v47  ;;  %v362_v59 = vrot.slane %v1298_v21, 3  ;;  %v363_v60 = vrot.slane %v1300_v22, 3  ;;  %v365_v61 = vrot.slane %v123_v25, 3  ;;  %v273_v62 = vrot.slane %v1298_v21, 2 }
  0x5b   :  { %1020 = vrot.lane.b32.xlu0 %v1019_v18, %s1129_s1  ;;  %881 = vmatpush3.bf16.msra.mxu0 %v878_v47  ;;  %v274_v63 = vrot.slane %v1300_v22, 2  ;;  %v276_v0 = vrot.slane %v123_v25, 2  ;;  %v886_v3 = vpack.c.bf16 %v471_v54, %v470_v53  ;;  %v1054_v6 = vpack.i.bf16 %v188_v58, %v186_v57  ;;  %v475_v18 = vld [vmem:[#allocation6 + $0x48] sm:$0xff]  ;;  %v477_v25 = vld [vmem:[#allocation6 + $0x58] sm:$0xff] }
  0x5c   :  { %883 = vmatprep.subr.bf16.mxu0 %v882_v48  ;;  %910 = vmatprep.subr.bf16.mxu1 %v878_v47  ;;  %v1049_v7 = vpack.i.bf16 %v361_v56, %v346_v52  ;;  %v364_v9 = vsel %vm326_vm0, %v362_v59, %v363_v60  ;;  %v366_v10 = vsel %vm326_vm0, %v363_v60, %v365_v61  ;;  %vm415_vm3 = vcmask 261120  }
  0x5d   :  { %918 = vmatpush3.bf16.msra.mxu1 %v878_v47  ;;  %v275_v14 = vsel %vm237_vm2, %v273_v62, %v274_v63  ;;  %v277_v15 = vsel %vm237_vm2, %v274_v63, %v276_v0  ;;  %v890_v16 = vpack.c.bf16 %v473_v5, %v472_v4  ;;  %v1064_v19 = vpack.i.bf16 %v366_v10, %v364_v9 }
  0x5e   :  { %1035 = vrot.lane.b32.xlu1 %v1034_v29, %s1131_s18  ;;  %911 = vmatprep.subr.bf16.mxu1 %v882_v48  ;;  %v1059_v20 = vpack.i.bf16 %v277_v15, %v275_v14  ;;  %v894_v23 = vpack.c.bf16 %v475_v18, %v474_v17  ;;  %v898_v26 = vpack.c.bf16 %v477_v25, %v476_v24  ;;  %v478_v29 = vld [vmem:[#allocation6 + $0x60] sm:$0xff]  ;;  %vm432_vm4 = vcmask 523264  }
  0x5f   :  { %1030 = vrot.lane.b32.xlu0 %v1029_v41, %s1130_s17  ;;  %885 = vmatpush3.bf16.msra.mxu0 %v882_v48  ;;  %v902_v31 = vpack.c.bf16 %v479_v30, %v478_v29  ;;  %v906_v36 = vpack.c.bf16 %v481_v35, %v480_v34  ;;  %vm449_vm5 = vcmask 785408   ;;  %vm733_vm6 = vcmask 1041409  }
  0x60   :  { %887 = vmatprep.subr.bf16.mxu0 %v886_v3  ;;  %vm736_vm7 = vcmask 1042434   ;;  %vm739_vm8 = vcmask 1043459   ;;  %vm742_vm9 = vcmask 1044484   ;;  %vm745_vm10 = vcmask 1045509  }
  0x61   :  { %919 = vmatpush3.bf16.msra.mxu1 %v882_v48  ;;  %vm748_vm11 = vcmask 1046534   ;;  %vm751_vm12 = vcmask 1047559  }
  0x62   :  { %1045 = vrot.lane.b32.xlu1 %v1044_v49, %s1129_s1  ;;  %912 = vmatprep.subr.bf16.mxu1 %v886_v3 }
  0x63   :  { %1040 = vrot.lane.b32.xlu0 %v1039_v55, %s1131_s18  ;;  %889 = vmatpush3.bf16.msra.mxu0 %v886_v3 }
  0x64   :  { %891 = vmatprep.subr.bf16.mxu0 %v890_v16 }
  0x65   :  { %920 = vmatpush3.bf16.msra.mxu1 %v886_v3 }
  0x66   :  { %1055 = vrot.lane.b32.xlu1 %v1054_v6, %s1130_s17  ;;  %913 = vmatprep.subr.bf16.mxu1 %v890_v16 }
  0x67   :  { %1050 = vrot.lane.b32.xlu0 %v1049_v7, %s1129_s1  ;;  %893 = vmatpush3.bf16.msra.mxu0 %v890_v16 }
  0x68   :  { %895 = vmatprep.subr.bf16.mxu0 %v894_v23 }
  0x69   :  { %921 = vmatpush3.bf16.msra.mxu1 %v890_v16 }
  0x6a   :  { %1065 = vrot.lane.b32.xlu1 %v1064_v19, %s1129_s1  ;;  %914 = vmatprep.subr.bf16.mxu1 %v894_v23 }
  0x6b   :  { %1060 = vrot.lane.b32.xlu0 %v1059_v20, %s1131_s18  ;;  %897 = vmatpush3.bf16.msra.mxu0 %v894_v23 }
  0x6c   :  { %899 = vmatprep.subr.bf16.mxu0 %v898_v26 }
  0x6d   :  { %922 = vmatpush3.bf16.msra.mxu1 %v894_v23 }
  0x6e   :  { %915 = vmatprep.subr.bf16.mxu1 %v898_v26 }
  0x6f   :  { %901 = vmatpush3.bf16.msra.mxu0 %v898_v26 }
  0x70   :  { %903 = vmatprep.subr.bf16.mxu0 %v902_v31 }
  0x71   :  { %923 = vmatpush3.bf16.msra.mxu1 %v898_v26 }
  0x72   :  { %916 = vmatprep.subr.bf16.mxu1 %v902_v31 }
  0x73   :  { %905 = vmatpush3.bf16.msra.mxu0 %v902_v31 }
  0x74   :  { %907 = vmatprep.subr.bf16.mxu0 %v906_v36 }
  0x75   :  { %924 = vmatpush3.bf16.msra.mxu1 %v902_v31 }
  0x76   :  { %917 = vmatprep.subr.bf16.mxu1 %v906_v36 }
  0x77   :  { %909 = vmatpush3.bf16.msra.mxu0 %v906_v36 }
  0x79   :  { %925 = vmatpush3.bf16.msra.mxu1 %v906_v36 }
  0xb0   :  { %v961_v37 = vpop.permute.xlu1 %960 }
  0xb1   :  { %v951_v38 = vpop.permute.xlu0 %950  ;;  %v963_v47 = vunpack.i.h.bf16 %v961_v37  ;;  %v962_v48 = vunpack.i.l.bf16 %v961_v37 }
  0xb2   :  { %v953_v39 = vunpack.i.h.bf16 %v951_v38  ;;  %v952_v40 = vunpack.i.l.bf16 %v951_v38 }
  0xb4   :  { %v966_v41 = vpop.permute.xlu1 %965  ;;  %v416_v49 = vsel %vm415_vm3, %v1180_v1, %v952_v40  ;;  %v417_v52 = vsel %vm415_vm3, %v1182_v2, %v953_v39 }
  0xb5   :  { %v956_v42 = vpop.permute.xlu0 %955  ;;  %v968_v56 = vunpack.i.h.bf16 %v966_v41  ;;  %v967_v57 = vunpack.i.l.bf16 %v966_v41 }
  0xb6   :  { %v958_v43 = vunpack.i.h.bf16 %v956_v42  ;;  %v957_v46 = vunpack.i.l.bf16 %v956_v42 }
  0xb7   :  { %v424_v3 = vsel %vm415_vm3, %v1192_v12, %v968_v56  ;;  %v418_v4 = vsel %vm415_vm3, %v1187_v8, %v967_v57 }
  0xb8   :  { %v976_v53 = vpop.permute.xlu1 %975  ;;  %v433_v54 = vsel %vm432_vm4, %v416_v49, %v957_v46  ;;  %v434_v55 = vsel %vm432_vm4, %v417_v52, %v958_v43 }
  0xb9   :  { %v971_v58 = vpop.permute.xlu0 %970  ;;  %v450_v59 = vsel %vm449_vm5, %v433_v54, %v962_v48  ;;  %v451_v60 = vsel %vm449_vm5, %v434_v55, %v963_v47  ;;  %v978_v61 = vunpack.i.h.bf16 %v976_v53  ;;  %v977_v62 = vunpack.i.l.bf16 %v976_v53 }
  0xba   :  { %854 = vmatprep.mubr.f32.mxu0 %v450_v59  ;;  %v973_v5 = vunpack.i.h.bf16 %v971_v58  ;;  %v972_v6 = vunpack.i.l.bf16 %v971_v58 }
  0xbb   :  { %855 = vmatmul.mubr.f32.vlgmr.msra.gmra.mrb[0].mxu0 %v451_v60  ;;  %v441_v7 = vsel %vm432_vm4, %v424_v3, %v978_v61  ;;  %v435_v9 = vsel %vm432_vm4, %v418_v4, %v977_v62 }
  0xbc   :  { %v986_v1 = vpop.permute.xlu1 %985  ;;  %v419_v8 = vsel %vm415_vm3, %v1190_v11, %v972_v6  ;;  %v425_v20 = vsel %vm415_vm3, %v1194_v13, %v973_v5 }
  0xbd   :  { %v988_v63 = vunpack.i.h.bf16 %v986_v1  ;;  %v987_v0 = vunpack.i.l.bf16 %v986_v1  ;;  %v981_v2 = vpop.permute.xlu0 %980 }
  0xbe   :  { %v983_v10 = vunpack.i.h.bf16 %v981_v2  ;;  %v982_v14 = vunpack.i.l.bf16 %v981_v2 }
  0xbf   :  { %v458_v15 = vsel %vm449_vm5, %v441_v7, %v988_v63  ;;  %v452_v16 = vsel %vm449_vm5, %v435_v9, %v987_v0 }
  0xc0   :  { %v996_v17 = vpop.permute.xlu1 %995  ;;  %866 = vmatprep.mubr.f32.mxu1 %v458_v15  ;;  %857 = vmatprep.mubr.f32.mxu0 %v452_v16  ;;  %v436_v23 = vsel %vm432_vm4, %v419_v8, %v982_v14  ;;  %v442_v24 = vsel %vm432_vm4, %v425_v20, %v983_v10 }
  0xc1   :  { %v991_v18 = vpop.permute.xlu0 %990  ;;  %v998_v30 = vunpack.i.h.bf16 %v996_v17  ;;  %v997_v31 = vunpack.i.l.bf16 %v996_v17 }
  0xc2   :  { %v993_v12 = vunpack.i.h.bf16 %v991_v18  ;;  %v992_v19 = vunpack.i.l.bf16 %v991_v18 }
  0xc3   :  { %v420_v39 = vsel %vm415_vm3, %v1219_v44, %v997_v31  ;;  %v426_v40 = vsel %vm415_vm3, %v1227_v50, %v998_v30 }
  0xc4   :  { %v1006_v25 = vpop.permute.xlu1 %1005  ;;  %v453_v26 = vsel %vm449_vm5, %v436_v23, %v992_v19  ;;  %v459_v29 = vsel %vm449_vm5, %v442_v24, %v993_v12 }
  0xc5   :  { %v1001_v34 = vpop.permute.xlu0 %1000  ;;  %858 = vmatmul.mubr.f32.gmra.mrb[2].mxu0 %v453_v26  ;;  %867 = vmatmul.mubr.f32.vlgmr.msra.gmra.mrb[0].mxu1 %v459_v29  ;;  %v1008_v35 = vunpack.i.h.bf16 %v1006_v25  ;;  %v1007_v36 = vunpack.i.l.bf16 %v1006_v25 }
  0xc6   :  { %v1003_v41 = vunpack.i.h.bf16 %v1001_v34  ;;  %v1002_v42 = vunpack.i.l.bf16 %v1001_v34 }
  0xc7   :  { %v437_v43 = vsel %vm432_vm4, %v420_v39, %v1007_v36  ;;  %v443_v46 = vsel %vm432_vm4, %v426_v40, %v1008_v35 }
  0xc8   :  { %v1016_v11 = vpop.permute.xlu1 %1015  ;;  %v421_v50 = vsel %vm415_vm3, %v1221_v45, %v1002_v42  ;;  %v427_v56 = vsel %vm415_vm3, %v1229_v51, %v1003_v41  ;;  %v1399_v41 = vld [vmem:[%s1441_s3 + $0x8] sm:$0xff] }
  0xc9   :  { %v1018_v37 = vunpack.i.h.bf16 %v1016_v11  ;;  %v1017_v38 = vunpack.i.l.bf16 %v1016_v11  ;;  %v1011_v13 = vpop.permute.xlu0 %1010 }
  0xca   :  { %v1013_v47 = vunpack.i.h.bf16 %v1011_v13  ;;  %v1012_v48 = vunpack.i.l.bf16 %v1011_v13 }
  0xcb   :  { %v454_v49 = vsel %vm449_vm5, %v437_v43, %v1017_v38  ;;  %v460_v52 = vsel %vm449_vm5, %v443_v46, %v1018_v37 }
  0xcc   :  { %v1026_v53 = vpop.permute.xlu1 %1025  ;;  %860 = vmatprep.mubr.f32.mxu0 %v454_v49  ;;  %869 = vmatprep.mubr.f32.mxu1 %v460_v52  ;;  %v438_v57 = vsel %vm432_vm4, %v421_v50, %v1012_v48  ;;  %v444_v58 = vsel %vm432_vm4, %v427_v56, %v1013_v47 }
  0xcd   :  { %v1021_v54 = vpop.permute.xlu0 %1020  ;;  %v1028_v62 = vunpack.i.h.bf16 %v1026_v53  ;;  %v1027_v1 = vunpack.i.l.bf16 %v1026_v53 }
  0xce   :  { %v1023_v44 = vunpack.i.h.bf16 %v1021_v54  ;;  %v1022_v55 = vunpack.i.l.bf16 %v1021_v54 }
  0xcf   :  { %v422_v5 = vsel %vm415_vm3, %v1256_v27, %v1027_v1  ;;  %v428_v6 = vsel %vm415_vm3, %v1263_v32, %v1028_v62 }
  0xd0   :  { %v1036_v59 = vpop.permute.xlu1 %1035  ;;  %v455_v60 = vsel %vm449_vm5, %v438_v57, %v1022_v55  ;;  %v461_v61 = vsel %vm449_vm5, %v444_v58, %v1023_v44 }
  0xd1   :  { %v1031_v63 = vpop.permute.xlu0 %1030  ;;  %861 = vmatmul.mubr.f32.gmra.mrb[4].mxu0 %v455_v60  ;;  %870 = vmatmul.mubr.f32.gmra.mrb[2].mxu1 %v461_v61  ;;  %v1038_v0 = vunpack.i.h.bf16 %v1036_v59  ;;  %v1037_v2 = vunpack.i.l.bf16 %v1036_v59 }
  0xd2   :  { %v1033_v7 = vunpack.i.h.bf16 %v1031_v63  ;;  %v1032_v9 = vunpack.i.l.bf16 %v1031_v63 }
  0xd3   :  { %v439_v10 = vsel %vm432_vm4, %v422_v5, %v1037_v2  ;;  %v445_v14 = vsel %vm432_vm4, %v428_v6, %v1038_v0 }
  0xd4   :  { %v1046_v45 = vpop.permute.xlu1 %1045  ;;  %v423_v32 = vsel %vm415_vm3, %v1258_v28, %v1032_v9  ;;  %v429_v20 = vsel %vm415_vm3, %v1265_v33, %v1033_v7 }
  0xd5   :  { %v1048_v3 = vunpack.i.h.bf16 %v1046_v45  ;;  %v1047_v4 = vunpack.i.l.bf16 %v1046_v45  ;;  %v1041_v51 = vpop.permute.xlu0 %1040 }
  0xd6   :  { %v1043_v15 = vunpack.i.h.bf16 %v1041_v51  ;;  %v1042_v16 = vunpack.i.l.bf16 %v1041_v51 }
  0xd7   :  { %v456_v17 = vsel %vm449_vm5, %v439_v10, %v1047_v4  ;;  %v462_v18 = vsel %vm449_vm5, %v445_v14, %v1048_v3 }
  0xd8   :  { %863 = vmatprep.mubr.f32.mxu0 %v456_v17  ;;  %872 = vmatprep.mubr.f32.mxu1 %v462_v18  ;;  %v1056_v12 = vpop.permute.xlu1 %1055  ;;  %v440_v25 = vsel %vm432_vm4, %v423_v32, %v1042_v16  ;;  %v446_v26 = vsel %vm432_vm4, %v429_v20, %v1043_v15  ;;  %v1419_v15 = vld [vmem:[%s1442_s4] ss:$0 sm:$0xff] }
  0xd9   :  { %v1051_v19 = vpop.permute.xlu0 %1050  ;;  %v1058_v23 = vunpack.i.h.bf16 %v1056_v12  ;;  %v1057_v24 = vunpack.i.l.bf16 %v1056_v12 }
  0xda   :  { %v1053_v27 = vunpack.i.h.bf16 %v1051_v19  ;;  %v1052_v8 = vunpack.i.l.bf16 %v1051_v19 }
  0xdb   :  { %v430_v33 = vsel %vm415_vm3, %v1298_v21, %v1057_v24  ;;  %v431_v37 = vsel %vm415_vm3, %v1300_v22, %v1058_v23  ;;  %v1404_v21 = vld [vmem:[%s1441_s3] sm:$0xff] }
  0xdc   :  { %v457_v29 = vsel %vm449_vm5, %v440_v25, %v1052_v8  ;;  %v463_v30 = vsel %vm449_vm5, %v446_v26, %v1053_v27  ;;  %v1066_v31 = vpop.permute.xlu1 %1065 }
  0xdd   :  { %v1061_v34 = vpop.permute.xlu0 %1060  ;;  %864 = vmatmul.mubr.f32.gmra.mrb[6].mxu0 %v457_v29  ;;  %873 = vmatmul.mubr.f32.gmra.mrb[4].mxu1 %v463_v30  ;;  %v1068_v35 = vunpack.i.h.bf16 %v1066_v31  ;;  %v1067_v36 = vunpack.i.l.bf16 %v1066_v31 }
  0xde   :  { %v1063_v28 = vunpack.i.h.bf16 %v1061_v34  ;;  %v1062_v11 = vunpack.i.l.bf16 %v1061_v34 }
  0xe0   :  { %v447_v38 = vsel %vm432_vm4, %v430_v33, %v1062_v11  ;;  %v448_v13 = vsel %vm432_vm4, %v431_v37, %v1063_v28 }
  0xe1   :  { %v464_v39 = vsel %vm449_vm5, %v447_v38, %v1067_v36  ;;  %v465_v40 = vsel %vm449_vm5, %v448_v13, %v1068_v35 }
  0xe2   :  { %875 = vmatprep.mubr.f32.mxu1 %v464_v39 }
  0xe3   :  { %876 = vmatmul.mubr.f32.gmra.mrb[6].mxu1 %v465_v40 }
 0x18e   :  { %v856_v22 = vpop.f32.mrb[0].mxu0 }
 0x18f   :  { %v630_v42 = vadd.f32 %v856_v22, %v1399_v41  ;;  %v548_v43 = vpop.f32.mrb[1].mxu0 }
 0x190   :  { %v629_v46 = vadd.f32 %v1404_v21, %v548_v43 }
 0x192   :  { %v645_v47 = vmax.f32 %v629_v46, %v630_v42 }
 0x194   :  { %v646_v48 = vrot.slane %v645_v47, 4 }
 0x196   :  { %v647_v49 = vmax.f32 %v645_v47, %v646_v48 }
 0x198   :  { %v859_v52 = vpop.f32.mrb[2].mxu0  ;;  %v868_v53 = vpop.f32.mrb[0].mxu1  ;;  %v648_v56 = vrot.slane %v647_v49, 2 }
 0x199   :  { %v632_v54 = vadd.f32 %v859_v52, %v1399_v41  ;;  %v638_v44 = vadd.f32 %v868_v53, %v1399_v41  ;;  %v558_v55 = vpop.f32.mrb[3].mxu0  ;;  %v588_v50 = vpop.f32.mrb[1].mxu1 }
 0x19a   :  { %v631_v57 = vadd.f32 %v1404_v21, %v558_v55  ;;  %v637_v58 = vadd.f32 %v1404_v21, %v588_v50  ;;  %v649_v61 = vmax.f32 %v647_v49, %v648_v56 }
 0x19c   :  { %v652_v59 = vmax.f32 %v631_v57, %v632_v54  ;;  %v673_v60 = vmax.f32 %v637_v58, %v638_v44  ;;  %v650_v63 = vrot.slane %v649_v61, 1 }
 0x19e   :  { %v653_v62 = vrot.slane %v652_v59, 4  ;;  %v651_v7 = vmax.f32 %v649_v61, %v650_v63  ;;  %v674_v16 = vrot.slane %v673_v60, 4 }
 0x1a0   :  { %v654_v1 = vmax.f32 %v652_v59, %v653_v62  ;;  %v708_v19 = vadd.f32 %v1419_v15, %v651_v7  ;;  %v675_v20 = vmax.f32 %v673_v60, %v674_v16 }
 0x1a2   :  { %v655_v0 = vrot.slane %v654_v1, 2  ;;  %v716_v26 = vmax.f32 %v708_v19, 0.0  ;;  %v676_v31 = vrot.slane %v675_v20, 2 }
 0x1a4   :  { %v656_v2 = vmax.f32 %v654_v1, %v655_v0  ;;  %v862_v45 = vpop.f32.mrb[4].mxu0  ;;  %v871_v3 = vpop.f32.mrb[2].mxu1  ;;  %v677_v42 = vmax.f32 %v675_v20, %v676_v31 }
 0x1a5   :  { %v634_v4 = vadd.f32 %v862_v45, %v1399_v41  ;;  %v640_v51 = vadd.f32 %v871_v3, %v1399_v41  ;;  %v568_v5 = vpop.f32.mrb[5].mxu0  ;;  %v598_v6 = vpop.f32.mrb[3].mxu1 }
 0x1a6   :  { %v657_v9 = vrot.slane %v656_v2, 1  ;;  %v633_v10 = vadd.f32 %v1404_v21, %v568_v5  ;;  %v639_v14 = vadd.f32 %v1404_v21, %v598_v6  ;;  %v678_v44 = vrot.slane %v677_v42, 1 }
 0x1a8   :  { %v658_v17 = vmax.f32 %v656_v2, %v657_v9  ;;  %v659_v18 = vmax.f32 %v633_v10, %v634_v4  ;;  %v680_v12 = vmax.f32 %v639_v14, %v640_v51  ;;  %v679_v63 = vmax.f32 %v677_v42, %v678_v44 }
 0x1aa   :  { %v709_v27 = vadd.f32 %v1419_v15, %v658_v17  ;;  %v660_v8 = vrot.slane %v659_v18, 4  ;;  %v681_v32 = vrot.slane %v680_v12, 4  ;;  %v712_v6 = vadd.f32 %v1419_v15, %v679_v63 }
 0x1ac   :  { %v717_v23 = vmax.f32 %v709_v27, 0.0  ;;  %v661_v24 = vmax.f32 %v659_v18, %v660_v8  ;;  %v682_v25 = vmax.f32 %v680_v12, %v681_v32  ;;  %v720_v18 = vmax.f32 %v712_v6, 0.0 }
 0x1ae   :  { %v732_v29 = vrot.slane %v717_v23, 7  ;;  %v662_v30 = vrot.slane %v661_v24, 2  ;;  %v683_v36 = vrot.slane %v682_v25, 2  ;;  %v741_v23 = vrot.slane %v720_v18, 4 }
 0x1b0   :  { %v734_v34 = vsel %vm733_vm6, %v732_v29, %v716_v26  ;;  %v663_v35 = vmax.f32 %v661_v24, %v662_v30  ;;  %v865_v28 = vpop.f32.mrb[6].mxu0  ;;  %v874_v11 = vpop.f32.mrb[4].mxu1  ;;  %v684_v46 = vmax.f32 %v682_v25, %v683_v36 }
 0x1b1   :  { %v636_v33 = vadd.f32 %v865_v28, %v1399_v41  ;;  %v642_v37 = vadd.f32 %v874_v11, %v1399_v41  ;;  %v578_v38 = vpop.f32.mrb[7].mxu0  ;;  %v608_v13 = vpop.f32.mrb[5].mxu1 }
 0x1b2   :  { %v664_v39 = vrot.slane %v663_v35, 1  ;;  %v635_v40 = vadd.f32 %v1404_v21, %v578_v38  ;;  %v641_v22 = vadd.f32 %v1404_v21, %v608_v13  ;;  %v685_v57 = vrot.slane %v684_v46, 1 }
 0x1b4   :  { %v665_v43 = vmax.f32 %v663_v35, %v664_v39  ;;  %v666_v47 = vmax.f32 %v635_v40, %v636_v33  ;;  %v687_v48 = vmax.f32 %v641_v22, %v642_v37  ;;  %v686_v45 = vmax.f32 %v684_v46, %v685_v57 }
 0x1b6   :  { %v710_v49 = vadd.f32 %v1419_v15, %v665_v43  ;;  %v667_v52 = vrot.slane %v666_v47, 4  ;;  %v688_v53 = vrot.slane %v687_v48, 4  ;;  %v877_v54 = vpop.f32.mrb[6].mxu1  ;;  %v713_v9 = vadd.f32 %v1419_v15, %v686_v45 }
 0x1b7   :  { %v644_v55 = vadd.f32 %v877_v54, %v1399_v41  ;;  %v618_v50 = vpop.f32.mrb[7].mxu1 }
 0x1b8   :  { %v718_v56 = vmax.f32 %v710_v49, 0.0  ;;  %v668_v58 = vmax.f32 %v666_v47, %v667_v52  ;;  %v689_v59 = vmax.f32 %v687_v48, %v688_v53  ;;  %v643_v60 = vadd.f32 %v1404_v21, %v618_v50 }
 0x1b9   :  { %v721_v19 = vmax.f32 %v713_v9, 0.0 }
 0x1ba   :  { %v735_v61 = vrot.slane %v718_v56, 6  ;;  %v669_v62 = vrot.slane %v668_v58, 2  ;;  %v690_v1 = vrot.slane %v689_v59, 2  ;;  %v694_v0 = vmax.f32 %v643_v60, %v644_v55 }
 0x1bb   :  { %v744_v25 = vrot.slane %v721_v19, 3 }
 0x1bc   :  { %v737_v2 = vsel %vm736_vm7, %v735_v61, %v734_v34  ;;  %v670_v3 = vmax.f32 %v668_v58, %v669_v62  ;;  %v691_v4 = vmax.f32 %v689_v59, %v690_v1  ;;  %v695_v51 = vrot.slane %v694_v0, 4 }
 0x1be   :  { %v671_v5 = vrot.slane %v670_v3, 1  ;;  %v692_v41 = vrot.slane %v691_v4, 1  ;;  %v696_v7 = vmax.f32 %v694_v0, %v695_v51 }
 0x1c0   :  { %v672_v10 = vmax.f32 %v670_v3, %v671_v5  ;;  %v693_v14 = vmax.f32 %v691_v4, %v692_v41  ;;  %v697_v21 = vrot.slane %v696_v7, 2 }
 0x1c2   :  { %v711_v16 = vadd.f32 %v1419_v15, %v672_v10  ;;  %v714_v17 = vadd.f32 %v1419_v15, %v693_v14  ;;  %v698_v12 = vmax.f32 %v696_v7, %v697_v21 }
 0x1c4   :  { %v719_v27 = vmax.f32 %v711_v16, 0.0  ;;  %v722_v8 = vmax.f32 %v714_v17, 0.0  ;;  %v699_v32 = vrot.slane %v698_v12, 1 }
 0x1c6   :  { %v738_v20 = vrot.slane %v719_v27, 5  ;;  %v700_v24 = vmax.f32 %v698_v12, %v699_v32  ;;  %v747_v30 = vrot.slane %v722_v8, 2 }
 0x1c8   :  { %v740_v26 = vsel %vm739_vm8, %v738_v20, %v737_v2  ;;  %v715_v31 = vadd.f32 %v1419_v15, %v700_v24 }
 0x1c9   :  { %v743_v29 = vsel %vm742_vm9, %v741_v23, %v740_v26 }
 0x1ca   :  { %v746_v34 = vsel %vm745_vm10, %v744_v25, %v743_v29  ;;  %v723_v36 = vmax.f32 %v715_v31, 0.0 }
 0x1cb   :  { %v749_v35 = vsel %vm748_vm11, %v747_v30, %v746_v34 }
 0x1cc   :  { %v750_v28 = vrot.slane %v723_v36, 1 }
 0x1ce   :  { %v752_v11 = vsel %vm751_vm12, %v750_v28, %v749_v35 }
 0x1cf   :  { %754 = vst [vmem:[%s1443_s5] sm:$0xff] %v752_v11 }
 0x1d0   :  { %759 = vsyncpa [#allocation7], 1 }
 0x1d1   :  { %760 = vsyncmov [#allocation3] }
 0x1d4   :  { %s761_s25 = vpop.sfrf %760 }
 0x1d5   :  { %p789_p1 = scmp.ne.s32.totalorder %s761_s25, 0 }
 0x1d7   :  { %765 = shalt.err (%p789_p1)  }

</bundles_post_ra>
